<compile_context>
chip_gen: v6e
topology: v6e:2x2x1
jax: 0.10.0
libtpu: 0.0.40
codegen_flags: <defaults>
</compile_context>

<pallas_src>
import functools

import jax
import jax.numpy as jnp
from jax import lax
from jax.experimental import pallas as pl
from jax.experimental.pallas import tpu as pltpu

_LANE = 128
_NT_DIMS = (((1,), (1,)), ((), ()))   # contract last dim of both operands: h @ h^T


def _leaky_relu(x, slope=0.01):
    return jnp.where(x > 0, x, slope * x)


def gat_subnet_kernel(x_ref, graph_ref, wh_ref, bh_ref, wo_ref, bo_ref, out_ref,
                      *, n_heads):
    """One grid step == one batch element; all tiles are 2-D.

    x_ref:     (N, in_c)
    graph_ref: (N, N)
    wh_ref:    (n_heads, in_c, hid_c)   per-head projection weights
    bh_ref:    (n_heads, 1, hid_c)      per-head biases
    wo_ref:    (n_heads, hid_c, out_p)  output weight split by head, out_c zero-padded to 128
    bo_ref:    (1, out_p)               output bias, zero-padded
    out_ref:   (N, out_p)               lane-dense padded output (sliced outside)
    """
    g = graph_ref[...]
    x = x_ref[...]
    N = x.shape[0]
    out_p = wo_ref.shape[2]

    def attend(h, bias):
        # scores = (h h^T) * graph; masked_fill(==0, -1e16); softmax; attn @ h + bias
        scores = lax.dot_general(h, h, _NT_DIMS,
                                 preferred_element_type=jnp.float32)   # (N, N)
        scores = scores * g
        # Faithful to the PyTorch masked_fill(scores == 0): also masks genuine
        # edges whose score is exactly 0 (reference quirk, kept as-is).
        scores = jnp.where(scores == 0.0, jnp.float32(-1e16), scores)
        m = jnp.max(scores, axis=-1, keepdims=True)
        e = jnp.exp(scores - m)
        s = jnp.sum(e, axis=-1, keepdims=True)
        attn = e / s   # exact divide (approx reciprocal caused the prior mismatch)
        return jnp.dot(attn, h, preferred_element_type=jnp.float32) + bias

    # h2 = leaky_relu(concat_k head_k) @ W_out, accumulated head-by-head so no
    # lane-axis concatenate is ever materialized.
    h2 = jnp.zeros((N, out_p), jnp.float32)
    for k in range(n_heads):   # n_heads tiny & static -> unrolled at trace time
        h_k = jnp.dot(x, wh_ref[k], preferred_element_type=jnp.float32)   # (N, hid_c)
        head_k = _leaky_relu(attend(h_k, bh_ref[k]))                      # (N, hid_c)
        h2 = h2 + jnp.dot(head_k, wo_ref[k], preferred_element_type=jnp.float32)

    out = _leaky_relu(attend(h2, bo_ref[...]))        # (N, out_p)
    out_ref[...] = out.astype(out_ref.dtype)          # dense 128-lane store


@jax.jit
def gat_subnet_pallas(x, graph, w_heads, b_heads, w_out, b_out):
    """x: (B,N,in_c); graph: (N,N); w_heads: (n_heads,in_c,hid_c);
    b_heads: (n_heads,1,hid_c); w_out: (n_heads*hid_c,out_c); b_out: (1,out_c)."""
    B, N, in_c = x.shape
    n_heads, _, hid_c = w_heads.shape
    out_c = w_out.shape[1]
    out_p = max(_LANE, pl.cdiv(out_c, _LANE) * _LANE)   # lane-dense output width

    # One-time parameter prep (cheap; constant-folded / hoisted in a real model):
    # split W_out rows by head and zero-pad out_c -> 128 lanes (exact: padded
    # columns contribute exactly 0 everywhere and are sliced off below).
    w_out_p = jnp.pad(w_out, ((0, 0), (0, out_p - out_c))).reshape(n_heads, hid_c, out_p)
    b_out_p = jnp.pad(b_out, ((0, 0), (0, out_p - out_c)))

    out_padded = pl.pallas_call(
        functools.partial(gat_subnet_kernel, n_heads=n_heads),
        out_shape=jax.ShapeDtypeStruct((B, N, out_p), jnp.float32),
        grid_spec=pltpu.PrefetchScalarGridSpec(
            num_scalar_prefetch=0,
            grid=(B,),                                    # batch axis -> 2 TCs on v7x
            in_specs=[
                pl.BlockSpec((None, N, in_c), lambda b: (b, 0, 0)),
                pl.BlockSpec((N, N), lambda b: (0, 0)),
                pl.BlockSpec((n_heads, in_c, hid_c), lambda b: (0, 0, 0)),
                pl.BlockSpec((n_heads, 1, hid_c), lambda b: (0, 0, 0)),
                pl.BlockSpec((n_heads, hid_c, out_p), lambda b: (0, 0, 0)),
                pl.BlockSpec((1, out_p), lambda b: (0, 0)),
            ],
            out_specs=pl.BlockSpec((None, N, out_p), lambda b: (b, 0, 0)),
        ),
        compiler_params=pltpu.CompilerParams(
            dimension_semantics=("parallel",)),
    )(x, graph, w_heads, b_heads, w_out_p, b_out_p)
    return out_padded[..., :out_c]


def gat_subnet_ref(x, graph, w_heads, b_heads, w_out, b_out):
    """Pure-JAX reference mirroring the PyTorch forward (HIGHEST-precision
    matmuls so the reference itself isn't computed in single-pass bf16)."""
    hp = lax.Precision.HIGHEST

    def gat_layer(feat, w, b):
        h = jnp.einsum("bnc,cd->bnd", feat, w, precision=hp)
        scores = jnp.einsum("bnd,bmd->bnm", h, h, precision=hp) * graph[None]
        scores = jnp.where(scores == 0.0, -1e16, scores)
        attn = jax.nn.softmax(scores, axis=2)
        return jnp.einsum("bnm,bmd->bnd", attn, h, precision=hp) + b

    heads = [gat_layer(x, w_heads[k], b_heads[k]) for k in range(w_heads.shape[0])]
    out = jnp.concatenate(heads, axis=-1)
    out = jax.nn.leaky_relu(out, 0.01)
    out = gat_layer(out, w_out, b_out)
    return jax.nn.leaky_relu(out, 0.01)


if __name__ == "__main__":
    # Small shapes consistent with GATSubNet(in_c, hid_c, out_c, n_heads)
    B, N = 2, 16
    in_c, hid_c, out_c, n_heads = 4, 8, 4, 2

    key = jax.random.PRNGKey(0)
    k_x, k_g, k_wh, k_bh, k_wo, k_bo = jax.random.split(key, 6)

    x = jax.random.normal(k_x, (B, N, in_c), dtype=jnp.float32)
    # Binary adjacency with self-loops (typical graph structure input).
    graph = (jax.random.uniform(k_g, (N, N)) > 0.5).astype(jnp.float32)
    graph = jnp.maximum(graph, jnp.eye(N, dtype=jnp.float32))

    # Parameters in (in, out) layout (nn.Linear stores (out, in)).  Scaled so
    # the raw h2.h2^T attention scores stay O(1): the module exponentiates raw
    # scores, so huge scores would turn any tiny matmul rounding difference
    # between the Pallas MXU path and the XLA reference into large deltas.
    scale = 0.25
    w_heads = scale * jax.random.normal(k_wh, (n_heads, in_c, hid_c), dtype=jnp.float32)
    b_heads = scale * jax.random.normal(k_bh, (n_heads, 1, hid_c), dtype=jnp.float32)
    w_out = scale * jax.random.normal(k_wo, (n_heads * hid_c, out_c), dtype=jnp.float32)
    b_out = scale * jax.random.normal(k_bo, (1, out_c), dtype=jnp.float32)

    out = gat_subnet_pallas(x, graph, w_heads, b_heads, w_out, b_out)
    out = jax.block_until_ready(out)

    ref = gat_subnet_ref(x, graph, w_heads, b_heads, w_out, b_out)
    assert out.shape == (B, N, out_c)
    # Tolerance absorbs residual differences between the kernel's f32 MXU
    # matmuls and the XLA HIGHEST-precision reference after the softmax's exp.
    assert jnp.allclose(out, ref, rtol=2e-2, atol=2e-2), "mismatch vs reference"

    print("KERNEL_OK")
</pallas_src>

<mosaic_0001>
module attributes {stable_mosaic.version = 11 : i64} {
  func.func @gat_subnet_kernel(%arg0: i32, %arg1: memref<1x16x4xf32, #tpu.memory_space<vmem>>, %arg2: memref<16x16xf32, #tpu.memory_space<vmem>>, %arg3: memref<2x4x8xf32, #tpu.memory_space<vmem>>, %arg4: memref<2x1x8xf32, #tpu.memory_space<vmem>>, %arg5: memref<2x8x128xf32, #tpu.memory_space<vmem>>, %arg6: memref<1x128xf32, #tpu.memory_space<vmem>>, %arg7: memref<1x16x128xf32, #tpu.memory_space<vmem>>) attributes {dimension_semantics = [#tpu.dimension_semantics<parallel>], iteration_bounds = array<i64: 2>, scalar_prefetch = 0 : i64, scratch_operands = 0 : i64, tpu.core_type = #tpu.core_type<tc>, window_params = [{transform_indices = @transform_0, window_bounds = array<i64: 1, 16, 4>}, {pipeline_mode = #tpu.pipeline_mode<synchronous>, transform_indices = @transform_1, window_bounds = array<i64: 16, 16>}, {pipeline_mode = #tpu.pipeline_mode<synchronous>, transform_indices = @transform_2, window_bounds = array<i64: 2, 4, 8>}, {pipeline_mode = #tpu.pipeline_mode<synchronous>, transform_indices = @transform_3, window_bounds = array<i64: 2, 1, 8>}, {pipeline_mode = #tpu.pipeline_mode<synchronous>, transform_indices = @transform_4, window_bounds = array<i64: 2, 8, 128>}, {pipeline_mode = #tpu.pipeline_mode<synchronous>, transform_indices = @transform_5, window_bounds = array<i64: 1, 128>}, {transform_indices = @transform_6, window_bounds = array<i64: 1, 16, 128>}]} {
    %c0 = arith.constant 0 : index
    %c0_0 = arith.constant 0 : index
    %0 = vector.load %arg2[%c0, %c0_0] : memref<16x16xf32, #tpu.memory_space<vmem>>, vector<16x16xf32>
    %c0_1 = arith.constant 0 : index
    %c0_2 = arith.constant 0 : index
    %c0_3 = arith.constant 0 : index
    %1 = vector.load %arg1[%c0_1, %c0_2, %c0_3] : memref<1x16x4xf32, #tpu.memory_space<vmem>>, vector<1x16x4xf32>
    %2 = vector.shape_cast %1 : vector<1x16x4xf32> to vector<16x4xf32>
    %cst = arith.constant 0.000000e+00 : f32
    %3 = vector.broadcast %cst : f32 to vector<16x128xf32>
    %c0_4 = arith.constant 0 : index
    %c0_5 = arith.constant 0 : index
    %c0_6 = arith.constant 0 : index
    %4 = vector.load %arg3[%c0_4, %c0_5, %c0_6] : memref<2x4x8xf32, #tpu.memory_space<vmem>>, vector<1x4x8xf32>
    %5 = vector.shape_cast %4 : vector<1x4x8xf32> to vector<4x8xf32>
    %cst_7 = arith.constant dense<0.000000e+00> : vector<16x8xf32>
    %6 = tpu.matmul %2, %5, %cst_7 {dimension_numbers = #tpu.dot_dimension_numbers<[1], [0], [0], [1], [0, 0, 1, 1], [], []>} : vector<16x4xf32>, vector<4x8xf32>, vector<16x8xf32> -> vector<16x8xf32>
    %c0_8 = arith.constant 0 : index
    %c0_9 = arith.constant 0 : index
    %c0_10 = arith.constant 0 : index
    %7 = vector.load %arg4[%c0_8, %c0_9, %c0_10] : memref<2x1x8xf32, #tpu.memory_space<vmem>>, vector<1x1x8xf32>
    %8 = vector.shape_cast %7 : vector<1x1x8xf32> to vector<1x8xf32>
    %cst_11 = arith.constant dense<0.000000e+00> : vector<16x16xf32>
    %9 = tpu.matmul %6, %6, %cst_11 {dimension_numbers = #tpu.dot_dimension_numbers<[1], [1], [0], [0], [0, 0, 1, 0], [], []>} : vector<16x8xf32>, vector<16x8xf32>, vector<16x16xf32> -> vector<16x16xf32>
    %10 = arith.mulf %9, %0 : vector<16x16xf32>
    %cst_12 = arith.constant 0.000000e+00 : f32
    %11 = vector.broadcast %cst_12 : f32 to vector<16x16xf32>
    %12 = arith.cmpf oeq, %10, %11 : vector<16x16xf32>
    %cst_13 = arith.constant -1.000000e+16 : f32
    %13 = vector.broadcast %cst_13 : f32 to vector<16x16xf32>
    %14 = arith.select %12, %13, %10 : vector<16x16xi1>, vector<16x16xf32>
    %cst_14 = arith.constant dense<0xFF800000> : vector<16xf32>
    %15 = vector.multi_reduction <maximumf>, %14, %cst_14 [1] : vector<16x16xf32> to vector<16xf32>
    %16 = vector.shape_cast %15 : vector<16xf32> to vector<16x1xf32>
    %17 = vector.broadcast %16 : vector<16x1xf32> to vector<16x16xf32>
    %18 = arith.subf %14, %17 : vector<16x16xf32>
    %19 = math.exp %18 : vector<16x16xf32>
    %cst_15 = arith.constant dense<0.000000e+00> : vector<16xf32>
    %20 = vector.multi_reduction <add>, %19, %cst_15 [1] : vector<16x16xf32> to vector<16xf32>
    %21 = vector.shape_cast %20 : vector<16xf32> to vector<16x1xf32>
    %22 = vector.broadcast %21 : vector<16x1xf32> to vector<16x16xf32>
    %23 = arith.divf %19, %22 : vector<16x16xf32>
    %cst_16 = arith.constant dense<0.000000e+00> : vector<16x8xf32>
    %24 = tpu.matmul %23, %6, %cst_16 {dimension_numbers = #tpu.dot_dimension_numbers<[1], [0], [0], [1], [0, 0, 1, 1], [], []>} : vector<16x16xf32>, vector<16x8xf32>, vector<16x8xf32> -> vector<16x8xf32>
    %25 = vector.broadcast %8 : vector<1x8xf32> to vector<16x8xf32>
    %26 = arith.addf %24, %25 : vector<16x8xf32>
    %cst_17 = arith.constant 0.000000e+00 : f32
    %27 = vector.broadcast %cst_17 : f32 to vector<16x8xf32>
    %28 = arith.cmpf ogt, %26, %27 : vector<16x8xf32>
    %cst_18 = arith.constant 0.00999999977 : f32
    %29 = vector.broadcast %cst_18 : f32 to vector<16x8xf32>
    %30 = arith.mulf %29, %26 : vector<16x8xf32>
    %31 = arith.select %28, %26, %30 : vector<16x8xi1>, vector<16x8xf32>
    %c0_19 = arith.constant 0 : index
    %c0_20 = arith.constant 0 : index
    %c0_21 = arith.constant 0 : index
    %32 = vector.load %arg5[%c0_19, %c0_20, %c0_21] : memref<2x8x128xf32, #tpu.memory_space<vmem>>, vector<1x8x128xf32>
    %33 = vector.shape_cast %32 : vector<1x8x128xf32> to vector<8x128xf32>
    %cst_22 = arith.constant dense<0.000000e+00> : vector<16x128xf32>
    %34 = tpu.matmul %31, %33, %cst_22 {dimension_numbers = #tpu.dot_dimension_numbers<[1], [0], [0], [1], [0, 0, 1, 1], [], []>} : vector<16x8xf32>, vector<8x128xf32>, vector<16x128xf32> -> vector<16x128xf32>
    %35 = arith.addf %3, %34 : vector<16x128xf32>
    %c1 = arith.constant 1 : index
    %c0_23 = arith.constant 0 : index
    %c0_24 = arith.constant 0 : index
    %36 = vector.load %arg3[%c1, %c0_23, %c0_24] : memref<2x4x8xf32, #tpu.memory_space<vmem>>, vector<1x4x8xf32>
    %37 = vector.shape_cast %36 : vector<1x4x8xf32> to vector<4x8xf32>
    %cst_25 = arith.constant dense<0.000000e+00> : vector<16x8xf32>
    %38 = tpu.matmul %2, %37, %cst_25 {dimension_numbers = #tpu.dot_dimension_numbers<[1], [0], [0], [1], [0, 0, 1, 1], [], []>} : vector<16x4xf32>, vector<4x8xf32>, vector<16x8xf32> -> vector<16x8xf32>
    %c1_26 = arith.constant 1 : index
    %c0_27 = arith.constant 0 : index
    %c0_28 = arith.constant 0 : index
    %39 = vector.load %arg4[%c1_26, %c0_27, %c0_28] : memref<2x1x8xf32, #tpu.memory_space<vmem>>, vector<1x1x8xf32>
    %40 = vector.shape_cast %39 : vector<1x1x8xf32> to vector<1x8xf32>
    %cst_29 = arith.constant dense<0.000000e+00> : vector<16x16xf32>
    %41 = tpu.matmul %38, %38, %cst_29 {dimension_numbers = #tpu.dot_dimension_numbers<[1], [1], [0], [0], [0, 0, 1, 0], [], []>} : vector<16x8xf32>, vector<16x8xf32>, vector<16x16xf32> -> vector<16x16xf32>
    %42 = arith.mulf %41, %0 : vector<16x16xf32>
    %cst_30 = arith.constant 0.000000e+00 : f32
    %43 = vector.broadcast %cst_30 : f32 to vector<16x16xf32>
    %44 = arith.cmpf oeq, %42, %43 : vector<16x16xf32>
    %cst_31 = arith.constant -1.000000e+16 : f32
    %45 = vector.broadcast %cst_31 : f32 to vector<16x16xf32>
    %46 = arith.select %44, %45, %42 : vector<16x16xi1>, vector<16x16xf32>
    %cst_32 = arith.constant dense<0xFF800000> : vector<16xf32>
    %47 = vector.multi_reduction <maximumf>, %46, %cst_32 [1] : vector<16x16xf32> to vector<16xf32>
    %48 = vector.shape_cast %47 : vector<16xf32> to vector<16x1xf32>
    %49 = vector.broadcast %48 : vector<16x1xf32> to vector<16x16xf32>
    %50 = arith.subf %46, %49 : vector<16x16xf32>
    %51 = math.exp %50 : vector<16x16xf32>
    %cst_33 = arith.constant dense<0.000000e+00> : vector<16xf32>
    %52 = vector.multi_reduction <add>, %51, %cst_33 [1] : vector<16x16xf32> to vector<16xf32>
    %53 = vector.shape_cast %52 : vector<16xf32> to vector<16x1xf32>
    %54 = vector.broadcast %53 : vector<16x1xf32> to vector<16x16xf32>
    %55 = arith.divf %51, %54 : vector<16x16xf32>
    %cst_34 = arith.constant dense<0.000000e+00> : vector<16x8xf32>
    %56 = tpu.matmul %55, %38, %cst_34 {dimension_numbers = #tpu.dot_dimension_numbers<[1], [0], [0], [1], [0, 0, 1, 1], [], []>} : vector<16x16xf32>, vector<16x8xf32>, vector<16x8xf32> -> vector<16x8xf32>
    %57 = vector.broadcast %40 : vector<1x8xf32> to vector<16x8xf32>
    %58 = arith.addf %56, %57 : vector<16x8xf32>
    %cst_35 = arith.constant 0.000000e+00 : f32
    %59 = vector.broadcast %cst_35 : f32 to vector<16x8xf32>
    %60 = arith.cmpf ogt, %58, %59 : vector<16x8xf32>
    %cst_36 = arith.constant 0.00999999977 : f32
    %61 = vector.broadcast %cst_36 : f32 to vector<16x8xf32>
    %62 = arith.mulf %61, %58 : vector<16x8xf32>
    %63 = arith.select %60, %58, %62 : vector<16x8xi1>, vector<16x8xf32>
    %c1_37 = arith.constant 1 : index
    %c0_38 = arith.constant 0 : index
    %c0_39 = arith.constant 0 : index
    %64 = vector.load %arg5[%c1_37, %c0_38, %c0_39] : memref<2x8x128xf32, #tpu.memory_space<vmem>>, vector<1x8x128xf32>
    %65 = vector.shape_cast %64 : vector<1x8x128xf32> to vector<8x128xf32>
    %cst_40 = arith.constant dense<0.000000e+00> : vector<16x128xf32>
    %66 = tpu.matmul %63, %65, %cst_40 {dimension_numbers = #tpu.dot_dimension_numbers<[1], [0], [0], [1], [0, 0, 1, 1], [], []>} : vector<16x8xf32>, vector<8x128xf32>, vector<16x128xf32> -> vector<16x128xf32>
    %67 = arith.addf %35, %66 : vector<16x128xf32>
    %c0_41 = arith.constant 0 : index
    %c0_42 = arith.constant 0 : index
    %68 = vector.load %arg6[%c0_41, %c0_42] : memref<1x128xf32, #tpu.memory_space<vmem>>, vector<1x128xf32>
    %cst_43 = arith.constant dense<0.000000e+00> : vector<16x16xf32>
    %69 = tpu.matmul %67, %67, %cst_43 {dimension_numbers = #tpu.dot_dimension_numbers<[1], [1], [0], [0], [0, 0, 1, 0], [], []>} : vector<16x128xf32>, vector<16x128xf32>, vector<16x16xf32> -> vector<16x16xf32>
    %70 = arith.mulf %69, %0 : vector<16x16xf32>
    %cst_44 = arith.constant 0.000000e+00 : f32
    %71 = vector.broadcast %cst_44 : f32 to vector<16x16xf32>
    %72 = arith.cmpf oeq, %70, %71 : vector<16x16xf32>
    %cst_45 = arith.constant -1.000000e+16 : f32
    %73 = vector.broadcast %cst_45 : f32 to vector<16x16xf32>
    %74 = arith.select %72, %73, %70 : vector<16x16xi1>, vector<16x16xf32>
    %cst_46 = arith.constant dense<0xFF800000> : vector<16xf32>
    %75 = vector.multi_reduction <maximumf>, %74, %cst_46 [1] : vector<16x16xf32> to vector<16xf32>
    %76 = vector.shape_cast %75 : vector<16xf32> to vector<16x1xf32>
    %77 = vector.broadcast %76 : vector<16x1xf32> to vector<16x16xf32>
    %78 = arith.subf %74, %77 : vector<16x16xf32>
    %79 = math.exp %78 : vector<16x16xf32>
    %cst_47 = arith.constant dense<0.000000e+00> : vector<16xf32>
    %80 = vector.multi_reduction <add>, %79, %cst_47 [1] : vector<16x16xf32> to vector<16xf32>
    %81 = vector.shape_cast %80 : vector<16xf32> to vector<16x1xf32>
    %82 = vector.broadcast %81 : vector<16x1xf32> to vector<16x16xf32>
    %83 = arith.divf %79, %82 : vector<16x16xf32>
    %cst_48 = arith.constant dense<0.000000e+00> : vector<16x128xf32>
    %84 = tpu.matmul %83, %67, %cst_48 {dimension_numbers = #tpu.dot_dimension_numbers<[1], [0], [0], [1], [0, 0, 1, 1], [], []>} : vector<16x16xf32>, vector<16x128xf32>, vector<16x128xf32> -> vector<16x128xf32>
    %85 = vector.broadcast %68 : vector<1x128xf32> to vector<16x128xf32>
    %86 = arith.addf %84, %85 : vector<16x128xf32>
    %cst_49 = arith.constant 0.000000e+00 : f32
    %87 = vector.broadcast %cst_49 : f32 to vector<16x128xf32>
    %88 = arith.cmpf ogt, %86, %87 : vector<16x128xf32>
    %cst_50 = arith.constant 0.00999999977 : f32
    %89 = vector.broadcast %cst_50 : f32 to vector<16x128xf32>
    %90 = arith.mulf %89, %86 : vector<16x128xf32>
    %91 = arith.select %88, %86, %90 : vector<16x128xi1>, vector<16x128xf32>
    %c0_51 = arith.constant 0 : index
    %c0_52 = arith.constant 0 : index
    %c0_53 = arith.constant 0 : index
    %92 = vector.load %arg7[%c0_51, %c0_52, %c0_53] : memref<1x16x128xf32, #tpu.memory_space<vmem>>, vector<1x16x128xf32>
    %93 = vector.shape_cast %92 : vector<1x16x128xf32> to vector<16x128xf32>
    %94 = vector.shape_cast %91 : vector<16x128xf32> to vector<1x16x128xf32>
    tpu.vector_store %arg7[%c0_51, %c0_52, %c0_53], %94 {strides = array<i32>} : memref<1x16x128xf32, #tpu.memory_space<vmem>>, vector<1x16x128xf32>,
    return
  }
  func.func @transform_0(%arg0: i32) -> (i32, i32, i32) {
    %c0_i32 = arith.constant 0 : i32
    %c0_i32_0 = arith.constant 0 : i32
    %c0_i32_1 = arith.constant 0 : i32
    return %arg0, %c0_i32, %c0_i32_0 : i32, i32, i32
  }
  func.func @transform_1(%arg0: i32) -> (i32, i32) {
    %c0_i32 = arith.constant 0 : i32
    %c0_i32_0 = arith.constant 0 : i32
    %c0_i32_1 = arith.constant 0 : i32
    return %c0_i32, %c0_i32_0 : i32, i32
  }
  func.func @transform_2(%arg0: i32) -> (i32, i32, i32) {
    %c0_i32 = arith.constant 0 : i32
    %c0_i32_0 = arith.constant 0 : i32
    %c0_i32_1 = arith.constant 0 : i32
    %c0_i32_2 = arith.constant 0 : i32
    return %c0_i32, %c0_i32_0, %c0_i32_1 : i32, i32, i32
  }
  func.func @transform_3(%arg0: i32) -> (i32, i32, i32) {
    %c0_i32 = arith.constant 0 : i32
    %c0_i32_0 = arith.constant 0 : i32
    %c0_i32_1 = arith.constant 0 : i32
    %c0_i32_2 = arith.constant 0 : i32
    return %c0_i32, %c0_i32_0, %c0_i32_1 : i32, i32, i32
  }
  func.func @transform_4(%arg0: i32) -> (i32, i32, i32) {
    %c0_i32 = arith.constant 0 : i32
    %c0_i32_0 = arith.constant 0 : i32
    %c0_i32_1 = arith.constant 0 : i32
    %c0_i32_2 = arith.constant 0 : i32
    return %c0_i32, %c0_i32_0, %c0_i32_1 : i32, i32, i32
  }
  func.func @transform_5(%arg0: i32) -> (i32, i32) {
    %c0_i32 = arith.constant 0 : i32
    %c0_i32_0 = arith.constant 0 : i32
    %c0_i32_1 = arith.constant 0 : i32
    return %c0_i32, %c0_i32_0 : i32, i32
  }
  func.func @transform_6(%arg0: i32) -> (i32, i32, i32) {
    %c0_i32 = arith.constant 0 : i32
    %c0_i32_0 = arith.constant 0 : i32
    %c0_i32_1 = arith.constant 0 : i32
    return %arg0, %c0_i32, %c0_i32_0 : i32, i32, i32
  }
}

</mosaic_0001>

<bundles_post_ra>
// kernel: gat_subnet_pallas.1
= control target key start
LH: loop header
LB: loop body
LE: loop exit
PB: predicated region body
PF: predicated region fallthrough
CT: control target
= control target key end

     0   :  { %s1467_s21 = smov 0   ;;  %s1570_s0 = inlined_call_operand.vmem [shape: f32[2,16,4], index: 0, kind: input, shape index: {}]   ;;  %s1571_s1 = inlined_call_operand.vmem [shape: f32[16,16], index: 1, kind: input, shape index: {}]   ;;  %s1572_s2 = inlined_call_operand.vmem [shape: f32[2,4,8], index: 2, kind: input, shape index: {}]   ;;  %s1573_s3 = inlined_call_operand.vmem [shape: f32[2,1,8], index: 3, kind: input, shape index: {}]   ;;  %s1574_s4 = inlined_call_operand.vmem [shape: f32[2,8,128], index: 4, kind: input, shape index: {}]   ;;  %s1575_s5 = inlined_call_operand.vmem [shape: f32[1,128], index: 5, kind: input, shape index: {}]   ;;  %s1576_s6 = inlined_call_operand.vmem [shape: f32[2,16,128], index: 6, kind: output, shape index: {}]  }
   0x1 LB: > { %s1251_s22 = sadd.s32 4294967295, %s1430_s21   ;;  %p1255_p0 = scmp.ge.s32.totalorder %s1430_s21, 1  ;;  %s1430_s21 = sphi %s1467_s21, %s16_s21  }
   0x2   : > { %p212_p1 = scmp.lt.s32.totalorder %s1430_s21, 3 }
   0x4   : > { %p213_p2 = pnand %p1255_p0, %p212_p1 }
   0x5   : > { %p242_p3 = scmp.lt.s32.totalorder (!%p213_p2), %s1251_s22, 1 }
   0x6   : > { %216 = sbr.rel (%p213_p2) target bundleno = 2566 (0xa06), region = 44 }
   0xb   : > { %v256_v0 = vld [vmem:[%s1572_s2] sm:$0xf]  ;;  %vm264_vm0 = vcmask 1043456   ;;  %s1578_s22 = smov (!%p242_p3, %s1251_s22), 1  ;;  %vm257_vm1 = vcmask 31744   ;;  %vm344_vm2 = vcmask 64512  }
   0xc   : > { %1330 = vmatprep.subr.msk.mxu0 %vm264_vm0, %v256_v0  ;;  %s1292_s25 = sshll.u32 %s1578_s22, 4  ;;  %v1499_v5 = vld [vmem:[%s1571_s1 + $0x8] sm:$0xff]  ;;  %v1504_v7 = vld [vmem:[%s1571_s1] sm:$0xff]  ;;  %vm432_vm5 = vcmask 130048  }
   0xd   : > { %1331 = vmatpush3.msk.msra.mxu0 %vm264_vm0, %v256_v0  ;;  %s246_s28 = scalar_lea.vmem %s1570_s0, %s1292_s25  ;;  %v1270_v25 = vld [vmem:[%s1572_s2 + $0x4] sm:$0xf]  ;;  %v1267_v34 = vld [vmem:[%s1573_s3] ss:$0 sm:$0xff]  ;;  %s251_s26 = scalar_lea.vmem %s1576_s6, %s1292_s25 }
   0xe   : > { %v254_v1 = vld [vmem:[%s246_s28] sm:$0xff]  ;;  %v255_v2 = vld [vmem:[%s246_s28 + $0x8] sm:$0xff] }
   0xf   : > { %1332 = vmatprep.mubr.msk.f32.mxu0 %vm257_vm1, %v254_v1  ;;  %v548_v39 = vld [vmem:[%s1574_s4] sm:$0xff] }
  0x10   : > { %1333 = vmatmul.mubr.msk.f32.vlgmr.msra.gmra.mxu0 %vm257_vm1, %v255_v2 }
  0xd0   : > { %v1334_v3 = vpop.f32.mrf.mxu0 }
  0xd1   : > { %1335 = vmatprep.subr.msk.mxu1 %vm344_vm2, %v1334_v3  ;;  %1342 = vmatprep.subr.mxu0 %v1334_v3 }
  0xd2   : > { %v334_v4 = vpop.f32.mrf.mxu0  ;;  %1336 = vmatpush3.xpose.msk.msra.mxu1 %vm344_vm2, %v1334_v3  ;;  %1343 = vmatpush3.msra.mxu0 %v1334_v3 }
  0xd3   : > { %1337 = vmatprep.subr.msk.mxu1 %vm344_vm2, %v334_v4  ;;  %1339 = vmatprep.mubr.msk.f32.mxu1 %vm344_vm2, %v334_v4 }
  0xd4   : > { %1344 = vmatprep.subr.mxu0 %v334_v4 }
  0xd5   : > { %1345 = vmatpush3.msra.mxu0 %v334_v4 }
  0xd6   : > { %1338 = vmatpush3.xpose.msk.msra.mxu1 %vm344_vm2, %v334_v4  ;;  %1349 = vmatprep.subr.msk.mxu0 %vm264_vm0, %v1270_v25  ;;  %v1282_v4 = vld [vmem:[%s1574_s4 + $0x8] sm:$0xff] }
  0xd9   : > { %1340 = vmatmul.mubr.msk.f32.vlgmr.msra.gmra.mxu1 %vm344_vm2, %v1334_v3 }
 0x199   : > { %v1341_v6 = vpop.f32.mrf.mxu1 }
 0x19a   : > { %v427_v8 = vmul.f32 %v1341_v6, %v1499_v5  ;;  %v1279_v6 = vld [vmem:[%s1573_s3 + $0x1] ss:$0 sm:$0xff] }
 0x19b   : > { %v417_v9 = vpop.f32.mrf.mxu1 }
 0x19c   : > { %v426_v10 = vmul.f32 %v417_v9, %v1504_v7  ;;  %vm429_vm4 = vcmp.eq.f32.partialorder %v427_v8, 0.0 }
 0x19d   : > { %v431_v13 = vsel %vm429_vm4, -1e+16, %v427_v8 }
 0x19e   : > { %vm428_vm3 = vcmp.eq.f32.partialorder %v426_v10, 0.0  ;;  %v436_v14 = vsel %vm432_vm5, %v431_v13, -inf }
 0x19f   : > { %v430_v11 = vsel %vm428_vm3, -1e+16, %v426_v10 }
 0x1a0   : > { %v433_v12 = vsel %vm432_vm5, %v430_v11, -inf }
 0x1a1   : > { %434 = vmax.xlane.f32.xlu0 %v433_v12 }
 0x1a5   : > { %437 = vmax.xlane.f32.xlu0 %v436_v14 }
 0x22a   : > { %v435_v15 = vpop.xlane.xlu0 %434 }
 0x22b   : > { %v439_v16 = vsub.f32 %v430_v11, %v435_v15 }
 0x22d   : > { %v441_v17 = vmul.f32 1.442695, %v439_v16 }
 0x22e   : > { %v438_v18 = vpop.xlane.xlu0 %437 }
 0x22f   : > { %1400 = vpow2.f32 %v441_v17  ;;  %v440_v19 = vsub.f32 %v431_v13, %v438_v18 }
 0x231   : > { %v443_v20 = vmul.f32 1.442695, %v440_v19 }
 0x233   : > { %1402 = vpow2.f32 %v443_v20 }
 0x23c   : > { %v1401_v21 = vpop.eup %1400 }
 0x23d   : > { %v445_v22 = vsel %vm432_vm5, %v1401_v21, 0.0 }
 0x23e   : > { %446 = vadd.xlane.f32.xlu1 %v445_v22 }
 0x240   : > { %v1403_v23 = vpop.eup %1402 }
 0x241   : > { %v448_v24 = vsel %vm432_vm5, %v1403_v23, 0.0 }
 0x242   : > { %449 = vadd.xlane.f32.xlu1 %v448_v24 }
 0x2c7   : > { %v447_v26 = vpop.xlane.xlu1 %446 }
 0x2c8   : > { %1404 = vrcp.f32 %v447_v26 }
 0x2cb   : > { %v450_v27 = vpop.xlane.xlu1 %449 }
 0x2cc   : > { %1406 = vrcp.f32 %v450_v27 }
 0x2d5   : > { %v1405_v28 = vpop.eup %1404 }
 0x2d6   : > { %v452_v29 = vmul.f32 %v1405_v28, %v1401_v21 }
 0x2d8   : > { %1346 = vmatprep.mubr.msk.f32.mxu0 %vm432_vm5, %v452_v29 }
 0x2d9   : > { %v1407_v30 = vpop.eup %1406 }
 0x2da   : > { %v454_v31 = vmul.f32 %v1407_v30, %v1403_v23 }
 0x2dc   : > { %1347 = vmatmul.mubr.msk.f32.vlgmr.msra.gmra.mxu0 %vm432_vm5, %v454_v31 }
 0x2dd   : > { %1350 = vmatpush3.msk.msra.mxu0 %vm264_vm0, %v1270_v25  ;;  %1351 = vmatprep.mubr.msk.f32.mxu0 %vm257_vm1, %v254_v1 }
 0x2e0   : > { %1352 = vmatmul.mubr.msk.f32.vlgmr.msra.gmra.mxu0 %vm257_vm1, %v255_v2 }
 0x39c   : > { %v1348_v32 = vpop.f32.mrf.mxu0 }
 0x39d   : > { %v539_v38 = vadd.f32 %v1348_v32, %v1267_v34 }
 0x39e   : > { %v533_v33 = vpop.f32.mrf.mxu0 }
 0x39f   : > { %v534_v36 = vadd.f32 %v1267_v34, %v533_v33  ;;  %v545_v41 = vmul.f32 0.01, %v539_v38  ;;  %vm543_vm7 = vcmp.gt.f32.partialorder %v539_v38, 0.0 }
 0x3a0   : > { %v1353_v35 = vpop.f32.mrf.mxu0 }
 0x3a1   : > { %1354 = vmatprep.subr.msk.mxu1 %vm344_vm2, %v1353_v35  ;;  %1361 = vmatprep.subr.mxu0 %v1353_v35  ;;  %v544_v40 = vmul.f32 0.01, %v534_v36  ;;  %vm542_vm6 = vcmp.gt.f32.partialorder %v534_v36, 0.0  ;;  %v547_v43 = vsel %vm543_vm7, %v539_v38, %v545_v41 }
 0x3a2   : > { %v620_v37 = vpop.f32.mrf.mxu0  ;;  %1355 = vmatpush3.xpose.msk.msra.mxu1 %vm344_vm2, %v1353_v35  ;;  %1362 = vmatpush3.msra.mxu0 %v1353_v35 }
 0x3a3   : > { %1356 = vmatprep.subr.msk.mxu1 %vm344_vm2, %v620_v37  ;;  %1358 = vmatprep.mubr.msk.f32.mxu1 %vm344_vm2, %v620_v37  ;;  %v546_v42 = vsel %vm542_vm6, %v534_v36, %v544_v40 }
 0x3a4   : > { %1363 = vmatprep.subr.mxu0 %v620_v37 }
 0x3a5   : > { %1364 = vmatpush3.msra.mxu0 %v620_v37 }
 0x3a6   : > { %1357 = vmatpush3.xpose.msk.msra.mxu1 %vm344_vm2, %v620_v37  ;;  %1368 = vmatprep.subr.mxu0 %v1282_v4 }
 0x3a7   : > { %1373 = vmatprep.subr.mxu1 %v548_v39 }
 0x3a9   : > { %1359 = vmatmul.mubr.msk.f32.vlgmr.msra.gmra.mxu1 %vm344_vm2, %v1353_v35 }
 0x3aa   : > { %1375 = vmatprep.mubr.msk.f32.mxu1 %vm344_vm2, %v546_v42  ;;  %1374 = vmatpush3.msra.mxu1 %v548_v39 }
 0x3ad   : > { %1376 = vmatmul.mubr.msk.f32.vlgmr.msra.gmra.mxu1 %vm344_vm2, %v547_v43 }
 0x469   : > { %v1360_v44 = vpop.f32.mrf.mxu1 }
 0x46a   : > { %v713_v45 = vmul.f32 %v1360_v44, %v1499_v5  ;;  %v1287_v44 = vld [vmem:[%s1575_s5] ss:$0 sm:$0xff] }
 0x46b   : > { %v703_v46 = vpop.f32.mrf.mxu1 }
 0x46c   : > { %v712_v47 = vmul.f32 %v703_v46, %v1504_v7  ;;  %vm715_vm8 = vcmp.eq.f32.partialorder %v713_v45, 0.0 }
 0x46d   : > { %v717_v48 = vsel %vm715_vm8, -1e+16, %v713_v45  ;;  %v1377_v16 = vpop.f32.mrf.mxu1 }
 0x46e   : > { %v721_v49 = vsel %vm432_vm5, %v717_v48, -inf  ;;  %vm714_vm9 = vcmp.eq.f32.partialorder %v712_v47, 0.0 }
 0x46f   : > { %722 = vmax.xlane.f32.xlu1 %v721_v49  ;;  %v716_v50 = vsel %vm714_vm9, -1e+16, %v712_v47  ;;  %v988_v19 = vpop.f32.mrf.mxu1 }
 0x470   : > { %v718_v51 = vsel %vm432_vm5, %v716_v50, -inf }
 0x471   : > { %719 = vmax.xlane.f32.xlu0 %v718_v51 }
 0x4f8   : > { %v723_v52 = vpop.xlane.xlu1 %722 }
 0x4f9   : > { %v725_v53 = vsub.f32 %v717_v48, %v723_v52 }
 0x4fa   : > { %v720_v54 = vpop.xlane.xlu0 %719 }
 0x4fb   : > { %v728_v55 = vmul.f32 1.442695, %v725_v53  ;;  %v724_v56 = vsub.f32 %v716_v50, %v720_v54 }
 0x4fd   : > { %1408 = vpow2.f32 %v728_v55  ;;  %v726_v57 = vmul.f32 1.442695, %v724_v56 }
 0x4ff   : > { %1410 = vpow2.f32 %v726_v57 }
 0x50a   : > { %v1409_v58 = vpop.eup %1408 }
 0x50b   : > { %v733_v59 = vsel %vm432_vm5, %v1409_v58, 0.0 }
 0x50c   : > { %v1411_v60 = vpop.eup %1410  ;;  %734 = vadd.xlane.f32.xlu1 %v733_v59 }
 0x50d   : > { %v730_v61 = vsel %vm432_vm5, %v1411_v60, 0.0 }
 0x50e   : > { %731 = vadd.xlane.f32.xlu0 %v730_v61 }
 0x595   : > { %v735_v62 = vpop.xlane.xlu1 %734 }
 0x596   : > { %1412 = vrcp.f32 %v735_v62 }
 0x597   : > { %v732_v63 = vpop.xlane.xlu0 %731 }
 0x598   : > { %1414 = vrcp.f32 %v732_v63 }
 0x5a3   : > { %v1413_v0 = vpop.eup %1412 }
 0x5a4   : > { %v739_v3 = vmul.f32 %v1413_v0, %v1409_v58 }
 0x5a5   : > { %v1415_v1 = vpop.eup %1414 }
 0x5a6   : > { %v737_v2 = vmul.f32 %v1415_v1, %v1411_v60 }
 0x5a8   : > { %1365 = vmatprep.mubr.msk.f32.mxu0 %vm432_vm5, %v737_v2 }
 0x5a9   : > { %1366 = vmatmul.mubr.msk.f32.vlgmr.msra.gmra.mxu0 %vm432_vm5, %v739_v3 }
 0x5aa   : > { %1369 = vmatpush3.msra.mxu0 %v1282_v4 }
 0x669   : > { %v1367_v8 = vpop.f32.mrf.mxu0 }
 0x66a   : > { %v824_v9 = vadd.f32 %v1367_v8, %v1279_v6 }
 0x66b   : > { %v818_v10 = vpop.f32.mrf.mxu0 }
 0x66c   : > { %v819_v11 = vadd.f32 %v1279_v6, %v818_v10  ;;  %v830_v12 = vmul.f32 0.01, %v824_v9  ;;  %vm828_vm10 = vcmp.gt.f32.partialorder %v824_v9, 0.0 }
 0x66e   : > { %vm827_vm11 = vcmp.gt.f32.partialorder %v819_v11, 0.0  ;;  %v829_v13 = vmul.f32 0.01, %v819_v11  ;;  %v832_v15 = vsel %vm828_vm10, %v824_v9, %v830_v12 }
 0x670   : > { %v831_v14 = vsel %vm827_vm11, %v819_v11, %v829_v13 }
 0x671   : > { %1370 = vmatprep.mubr.msk.f32.mxu0 %vm344_vm2, %v831_v14 }
 0x672   : > { %1371 = vmatmul.mubr.msk.f32.vlgmr.msra.gmra.mxu0 %vm344_vm2, %v832_v15 }
 0x732   : > { %v1372_v17 = vpop.f32.mrf.mxu0 }
 0x733   : > { %v994_v18 = vadd.f32 %v1377_v16, %v1372_v17 }
 0x734   : > { %v907_v20 = vpop.f32.mrf.mxu0 }
 0x735   : > { %v989_v21 = vadd.f32 %v988_v19, %v907_v20  ;;  %1378 = vmatprep.subr.mxu0 %v994_v18  ;;  %1385 = vmatprep.subr.mxu1 %v994_v18 }
 0x736   : > { %1379 = vmatpush3.xpose.msra.mxu0 %v994_v18  ;;  %1386 = vmatpush3.msra.mxu1 %v994_v18 }
 0x737   : > { %1380 = vmatprep.subr.mxu0 %v989_v21  ;;  %1382 = vmatprep.mubr.f32.mxu0 %v989_v21 }
 0x738   : > { %1387 = vmatprep.subr.mxu1 %v989_v21 }
 0x739   : > { %1388 = vmatpush3.msra.mxu1 %v989_v21 }
 0x73a   : > { %1381 = vmatpush3.xpose.msra.mxu0 %v989_v21 }
 0x73d   : > { %1383 = vmatmul.mubr.f32.vlgmr.msra.gmra.mxu0 %v994_v18 }
 0x7fd   : > { %v1384_v22 = vpop.f32.mrf.mxu0 }
 0x7fe   : > { %v1074_v23 = vmul.f32 %v1384_v22, %v1499_v5 }
 0x7ff   : > { %v1064_v24 = vpop.f32.mrf.mxu0 }
 0x800   : > { %v1073_v25 = vmul.f32 %v1064_v24, %v1504_v7  ;;  %vm1076_vm12 = vcmp.eq.f32.partialorder %v1074_v23, 0.0 }
 0x801   : > { %v1078_v26 = vsel %vm1076_vm12, -1e+16, %v1074_v23 }
 0x802   : > { %v1082_v27 = vsel %vm432_vm5, %v1078_v26, -inf  ;;  %vm1075_vm13 = vcmp.eq.f32.partialorder %v1073_v25, 0.0 }
 0x803   : > { %1083 = vmax.xlane.f32.xlu1 %v1082_v27  ;;  %v1077_v28 = vsel %vm1075_vm13, -1e+16, %v1073_v25 }
 0x804   : > { %v1079_v29 = vsel %vm432_vm5, %v1077_v28, -inf }
 0x805   : > { %1080 = vmax.xlane.f32.xlu0 %v1079_v29 }
 0x88c   : > { %v1084_v30 = vpop.xlane.xlu1 %1083 }
 0x88d   : > { %v1086_v31 = vsub.f32 %v1078_v26, %v1084_v30 }
 0x88e   : > { %v1081_v32 = vpop.xlane.xlu0 %1080 }
 0x88f   : > { %v1089_v33 = vmul.f32 1.442695, %v1086_v31  ;;  %v1085_v34 = vsub.f32 %v1077_v28, %v1081_v32 }
 0x891   : > { %1416 = vpow2.f32 %v1089_v33  ;;  %v1087_v5 = vmul.f32 1.442695, %v1085_v34 }
 0x893   : > { %1418 = vpow2.f32 %v1087_v5 }
 0x89e   : > { %v1417_v35 = vpop.eup %1416 }
 0x89f   : > { %v1094_v7 = vsel %vm432_vm5, %v1417_v35, 0.0 }
 0x8a0   : > { %v1419_v36 = vpop.eup %1418  ;;  %1095 = vadd.xlane.f32.xlu1 %v1094_v7 }
 0x8a1   : > { %v1091_v37 = vsel %vm432_vm5, %v1419_v36, 0.0 }
 0x8a2   : > { %1092 = vadd.xlane.f32.xlu0 %v1091_v37 }
 0x929   : > { %v1096_v38 = vpop.xlane.xlu1 %1095 }
 0x92a   : > { %1420 = vrcp.f32 %v1096_v38 }
 0x92b   : > { %v1093_v39 = vpop.xlane.xlu0 %1092 }
 0x92c   : > { %1422 = vrcp.f32 %v1093_v39 }
 0x937   : > { %v1421_v40 = vpop.eup %1420 }
 0x938   : > { %v1100_v43 = vmul.f32 %v1421_v40, %v1417_v35 }
 0x939   : > { %v1423_v41 = vpop.eup %1422 }
 0x93a   : > { %v1098_v42 = vmul.f32 %v1423_v41, %v1419_v36 }
 0x93c   : > { %1389 = vmatprep.mubr.msk.f32.mxu1 %vm432_vm5, %v1098_v42 }
 0x93d   : > { %1390 = vmatmul.mubr.msk.f32.vlgmr.msra.gmra.mxu1 %vm432_vm5, %v1100_v43 }
 0x9fd   : > { %v1391_v45 = vpop.f32.mrf.mxu1 }
 0x9fe   : > { %v1185_v46 = vadd.f32 %v1391_v45, %v1287_v44 }
 0x9ff   : > { %v1179_v47 = vpop.f32.mrf.mxu1 }
 0xa00   : > { %vm1189_vm14 = vcmp.gt.f32.partialorder %v1185_v46, 0.0  ;;  %v1191_v48 = vmul.f32 0.01, %v1185_v46  ;;  %v1180_v49 = vadd.f32 %v1287_v44, %v1179_v47 }
 0xa02   : > { %v1193_v50 = vsel %vm1189_vm14, %v1185_v46, %v1191_v48  ;;  %vm1188_vm15 = vcmp.gt.f32.partialorder %v1180_v49, 0.0  ;;  %v1190_v51 = vmul.f32 0.01, %v1180_v49 }
 0xa03   : > { %1195 = vst [vmem:[%s251_s26 + $0x8] sm:$0xff] %v1193_v50 }
 0xa04   : > { %v1192_v52 = vsel %vm1188_vm15, %v1180_v49, %v1190_v51 }
 0xa05   : > { %1194 = vst [vmem:[%s251_s26] sm:$0xff] %v1192_v52 }
 0xa06 PF: > { %s16_s21 = sadd.s32 1, %s1430_s21  }
 0xa07   : > { %p13_p4 = scmp.ge.s32.totalorder %s16_s21, 4  }
 0xa09   :  { %15 = sbr.rel (!%p13_p4) target bundleno = 1 (0x1), region = 77 }

</bundles_post_ra>
